<compile_context>
chip_gen: v7x
topology: tpu7x:2x2x1
jax: 0.10.0
libtpu: 0.0.40
codegen_flags: <defaults>
</compile_context>

<pallas_src>
import jax
import jax.numpy as jnp
from jax.experimental import pallas as pl
from jax.experimental.pallas import tpu as pltpu


_TARGET_BLOCK_BYTES = 4 << 20  # ~4 MiB per-operand block (fits v5e/v6e/v7x budgets)


def _sub_abs_kernel(a_ref, b_ref, o_ref):
    # Elementwise |a - b| on the current block. Pure VPU work.
    o_ref[...] = jnp.abs(a_ref[...] - b_ref[...])


def _cdiv(a, b):
    return -(-a // b)


def _align_down(x, a):
    return (x // a) * a


def _align_up(x, a):
    return ((x + a - 1) // a) * a


def _sublane_align(itemsize):
    # Packed sublane multiples: f32 -> 8, bf16/f16 -> 16, int8/fp8 -> 32.
    return {4: 8, 2: 16, 1: 32}.get(itemsize, 8)


def _pick_lane_width(n):
    """Largest lane-dense width (multiple of 128) dividing n, capped at 4096."""
    for w in (4096, 2048, 1024, 512, 256, 128):
        if n % w == 0:
            return w
    return None


def _even_out_grid(total, tile, align):
    """Nudge `tile` so cdiv(total, tile) is >= 2 and even when possible.

    Balances v7x's two TensorCores on the single "parallel" grid axis.
    Never requires tile to divide total (partial last block is masked).
    """
    g = _cdiv(total, max(tile, 1))
    if g <= 1:
        cand = _align_up(_cdiv(total, 2), align)
        if align <= cand < total:
            return cand
        return min(tile, total)
    if g % 2 == 1:
        cand = _align_up(_cdiv(total, g + 1), align)
        if align <= cand < total and _cdiv(total, cand) % 2 == 0:
            return cand
    return tile


def _pick_row_tile(rows, width, itemsize):
    """Row tile: dtype-aligned, block ~<= 4 MiB, cdiv grid (no divisibility)."""
    align = _sublane_align(itemsize)
    if rows <= align:
        return rows  # full-extent rows block: always layout-legal
    bytes_per_row = width * itemsize
    target = max(align, _align_down(_TARGET_BLOCK_BYTES // max(bytes_per_row, 1), align))
    row_tile = max(align, min(target, _align_down(rows, align)))
    return _even_out_grid(rows, row_tile, align)


def _pick_chunk_1d(n, itemsize):
    """Lane-dense 1D chunk (multiple of 1024*packing), ~4 MiB, cdiv grid."""
    align = 1024 * max(1, 4 // itemsize)
    if n <= align:
        return n  # tiny ragged tensor: full-extent block
    target = max(align, _align_down(_TARGET_BLOCK_BYTES // itemsize, align))
    chunk = max(align, min(target, _align_down(n, align)))
    return _even_out_grid(n, chunk, align)


def _launch(a_v, b_v, block_shape, grid, n, itemsize, donate):
    if len(block_shape) == 2:
        idx_map = lambda i: (i, 0)
    else:
        idx_map = lambda i: (i,)

    block_bytes = itemsize
    for d in block_shape:
        block_bytes *= d

    # 3 streams (2 inputs + 1 output) x 2 buffers each, plus headroom.
    # Explicit limit so the footprint is honored on v5e (16 MiB scoped default)
    # while staying well under v7x's 64 MiB physical VMEM.
    vmem_limit = int(min(max(6 * block_bytes + (8 << 20), 16 << 20), 40 << 20))

    return pl.pallas_call(
        _sub_abs_kernel,
        out_shape=jax.ShapeDtypeStruct(a_v.shape, a_v.dtype),
        grid=grid,
        in_specs=[
            pl.BlockSpec(block_shape, idx_map),
            pl.BlockSpec(block_shape, idx_map),
        ],
        out_specs=pl.BlockSpec(block_shape, idx_map),
        compiler_params=pltpu.CompilerParams(
            dimension_semantics=("parallel",),  # v7x: shard the grid across TCs
            vmem_limit_bytes=vmem_limit,
        ),
        cost_estimate=pl.CostEstimate(
            flops=n, transcendentals=0, bytes_accessed=3 * n * itemsize
        ),
        input_output_aliases=({0: 0} if donate else {}),
    )(a_v, b_v)


def subtract_abs_forward(inputs, donate_input=False):
    """Equivalent of Subtract()(inputs) in PyTorch: abs(inputs[0] - inputs[1]).

    donate_input=True writes the result into input1's HBM buffer
    (input_output_aliases={0: 0}); only use when the caller can donate.
    """
    a, b = inputs
    assert a.shape == b.shape, f"shape mismatch: {a.shape} vs {b.shape}"
    assert a.dtype == b.dtype, f"dtype mismatch: {a.dtype} vs {b.dtype}"

    orig_shape = a.shape
    n = a.size
    itemsize = jnp.dtype(a.dtype).itemsize

    width = _pick_lane_width(n)
    if width is not None:
        # Lane-dense 2D slab tiled over rows.
        rows = n // width
        row_tile = _pick_row_tile(rows, width, itemsize)
        a_v = jnp.reshape(a, (rows, width))
        b_v = jnp.reshape(b, (rows, width))
        out = _launch(a_v, b_v, (row_tile, width), (_cdiv(rows, row_tile),),
                      n, itemsize, donate_input)
    else:
        # Ragged element count: 1D view tiled with a lane-dense chunk under a
        # cdiv grid (masked partial last block) instead of one monolithic block.
        chunk = _pick_chunk_1d(n, itemsize)
        a_v = jnp.reshape(a, (n,))
        b_v = jnp.reshape(b, (n,))
        out = _launch(a_v, b_v, (chunk,), (_cdiv(n, chunk),),
                      n, itemsize, donate_input)

    return jnp.reshape(out, orig_shape)


if __name__ == "__main__":
    key = jax.random.PRNGKey(0)
    k1, k2, k3, k4, k5, k6, k7, k8 = jax.random.split(key, 8)

    # Main test: NCHW pair, batch=2, channels=4, spatial=16x16 (lane-dense path).
    x1 = jax.random.normal(k1, (2, 4, 16, 16), dtype=jnp.float32)
    x2 = jax.random.normal(k2, (2, 4, 16, 16), dtype=jnp.float32)
    y = jax.block_until_ready(subtract_abs_forward([x1, x2]))
    assert y.shape == x1.shape and y.dtype == x1.dtype
    assert bool(jnp.allclose(y, jnp.abs(x1 - x2), atol=0.0, rtol=0.0))

    # Ragged element count (n % 128 != 0): exercises the 1D lane-dense path.
    z1 = jax.random.normal(k3, (2, 3, 5, 7), dtype=jnp.float32)
    z2 = jax.random.normal(k4, (2, 3, 5, 7), dtype=jnp.float32)
    w = jax.block_until_ready(subtract_abs_forward([z1, z2]))
    assert bool(jnp.allclose(w, jnp.abs(z1 - z2), atol=0.0, rtol=0.0))

    # Rows not a multiple of the tile: exercises cdiv grid + masked edge block.
    u1 = jax.random.normal(k5, (3, 5, 8, 128), dtype=jnp.float32)
    u2 = jax.random.normal(k6, (3, 5, 8, 128), dtype=jnp.float32)
    v = jax.block_until_ready(subtract_abs_forward([u1, u2]))
    assert bool(jnp.allclose(v, jnp.abs(u1 - u2), atol=0.0, rtol=0.0))

    # bf16: exercises dtype-aware sublane alignment (16-row tiles) + even grid.
    p1 = jax.random.normal(k7, (16, 64, 128), dtype=jnp.bfloat16)
    p2 = jax.random.normal(k8, (16, 64, 128), dtype=jnp.bfloat16)
    q = jax.block_until_ready(subtract_abs_forward([p1, p2]))
    assert q.dtype == jnp.bfloat16
    assert bool(jnp.allclose(q.astype(jnp.float32),
                             jnp.abs(p1 - p2).astype(jnp.float32),
                             atol=0.0, rtol=0.0))

    print("KERNEL_OK")
</pallas_src>

<mosaic_0001>
module attributes {stable_mosaic.version = 11 : i64} {
  func.func @_sub_abs_kernel(%arg0: i32, %arg1: memref<1x2048xf32, #tpu.memory_space<vmem>>, %arg2: memref<1x2048xf32, #tpu.memory_space<vmem>>, %arg3: memref<1x2048xf32, #tpu.memory_space<vmem>>) attributes {dimension_semantics = [#tpu.dimension_semantics<parallel>], iteration_bounds = array<i64: 1>, scalar_prefetch = 0 : i64, scratch_operands = 0 : i64, tpu.core_type = #tpu.core_type<tc>, window_params = [{transform_indices = @transform_0, window_bounds = array<i64: 1, 2048>}, {transform_indices = @transform_1, window_bounds = array<i64: 1, 2048>}, {transform_indices = @transform_2, window_bounds = array<i64: 1, 2048>}]} {
    %c0 = arith.constant 0 : index
    %c0_0 = arith.constant 0 : index
    %0 = vector.load %arg1[%c0, %c0_0] : memref<1x2048xf32, #tpu.memory_space<vmem>>, vector<1x2048xf32>
    %c0_1 = arith.constant 0 : index
    %c0_2 = arith.constant 0 : index
    %1 = vector.load %arg2[%c0_1, %c0_2] : memref<1x2048xf32, #tpu.memory_space<vmem>>, vector<1x2048xf32>
    %2 = arith.subf %0, %1 : vector<1x2048xf32>
    %3 = math.absf %2 : vector<1x2048xf32>
    %c0_3 = arith.constant 0 : index
    %c0_4 = arith.constant 0 : index
    %4 = vector.load %arg3[%c0_3, %c0_4] : memref<1x2048xf32, #tpu.memory_space<vmem>>, vector<1x2048xf32>
    tpu.vector_store %arg3[%c0_3, %c0_4], %3 {strides = array<i32>} : memref<1x2048xf32, #tpu.memory_space<vmem>>, vector<1x2048xf32>,
    return
  }
  func.func @transform_0(%arg0: i32) -> (i32, i32) {
    %c0_i32 = arith.constant 0 : i32
    %c0_i32_0 = arith.constant 0 : i32
    return %arg0, %c0_i32 : i32, i32
  }
  func.func @transform_1(%arg0: i32) -> (i32, i32) {
    %c0_i32 = arith.constant 0 : i32
    %c0_i32_0 = arith.constant 0 : i32
    return %arg0, %c0_i32 : i32, i32
  }
  func.func @transform_2(%arg0: i32) -> (i32, i32) {
    %c0_i32 = arith.constant 0 : i32
    %c0_i32_0 = arith.constant 0 : i32
    return %arg0, %c0_i32 : i32, i32
  }
}

</mosaic_0001>

<bundles_post_ra>
// kernel: tpu_custom_call.1
= control target key start
LH: loop header
LB: loop body
LE: loop exit
PB: predicated region body
PF: predicated region fallthrough
CT: control target
= control target key end

     0   :  { %7 = vsyncpa [#allocation3], 0  ;;  %s191_s0 = inlined_call_operand.hbm [shape: f32[1,2048], index: 0, kind: input, shape index: {}]   ;;  %s192_s1 = inlined_call_operand.hbm [shape: f32[1,2048], index: 1, kind: input, shape index: {}]   ;;  %s193_s2 = inlined_call_operand.hbm [shape: f32[1,2048], index: 2, kind: output, shape index: {}]  }
   0x1   :  { %8 = vsyncpa [#allocation6], 0 }
   0x2   :  { %9 = vsyncpa [#allocation4], 0  ;;  %s137_s9 = smov [#allocation2]   ;;  %s138_s11 = smov [#allocation5]  }
   0x3   :  { %s16_s10 = sshll.u32 %s137_s9, 4  ;;  %s26_s12 = sshll.u32 %s138_s11, 4  ;;  %s17_s10 = int_to_ptr.vmem [resolvable:$true] %s16_s10  ;;  %s27_s12 = int_to_ptr.vmem [resolvable:$true] %s26_s12 }
   0x4   :  { %s65_s15 = scalar_lea.hbm %s191_s0, 256 }
   0x5   :  { %p66_p0 = scmp.ne.s32.totalorder %s191_s0, %s65_s15  ;;  %p69_p1 = scmp.lt.u32.totalorder %s65_s15, %s191_s0 }
   0x7   :  { %p71_p2 = pnand %p69_p1, %p66_p0 }
   0x9   :  { %74 = shalt.err (!%p71_p2)
}
   0xa   :  { %s75_s20 = scalar_lea.vmem %s17_s10, 256  ;;  %p80_p4 = scmp.lt.s32.totalorder %s17_s10, %s17_s10 }
   0xb   :  { %p76_p3 = scmp.ne.s32.totalorder %s17_s10, %s75_s20  ;;  %p81_p5 = scmp.lt.s32.totalorder %s75_s20, %s75_s20 }
   0xd   :  { %p82_p6 = por %p81_p5, %p80_p4 }
   0xf   :  { %p83_p7 = pnand %p82_p6, %p76_p3 }
  0x11   :  { %86 = shalt.err (!%p83_p7)
}
  0x12   :  { %19 = dma.hbm_to_vmem [thread:$0]  %s191_s0, 256, %s17_s10, [#allocation3]  }
  0x13   :  { %s87_s25 = scalar_lea.hbm %s192_s1, 256 }
  0x14   :  { %p88_p8 = scmp.ne.s32.totalorder %s192_s1, %s87_s25  ;;  %p91_p9 = scmp.lt.u32.totalorder %s87_s25, %s192_s1 }
  0x16   :  { %p93_p10 = pnand %p91_p9, %p88_p8 }
  0x18   :  { %96 = shalt.err (!%p93_p10)
}
  0x19   :  { %s97_s30 = scalar_lea.vmem %s27_s12, 256  ;;  %p102_p12 = scmp.lt.s32.totalorder %s27_s12, %s27_s12 }
  0x1a   :  { %p98_p11 = scmp.ne.s32.totalorder %s27_s12, %s97_s30  ;;  %p103_p13 = scmp.lt.s32.totalorder %s97_s30, %s97_s30 }
  0x1c   :  { %p104_p0 = por %p103_p13, %p102_p12 }
  0x1e   :  { %p105_p1 = pnand %p104_p0, %p98_p11 }
  0x20   :  { %108 = shalt.err (!%p105_p1)
}
  0x21   :  { %29 = dma.hbm_to_vmem [thread:$0]  %s192_s1, 256, %s27_s12, [#allocation6]  }
  0x22   :  { %131 = dma.done.wait [#allocation3], 256  }
  0x23   :  { %132 = vsyncadd [#allocation3], 4294967040 }
  0x24   :  { %133 = dma.done.wait [#allocation6], 256  }
  0x25   :  { %134 = vsyncadd [#allocation6], 4294967040  ;;  %v36_v0 = vld [vmem:[#allocation2] sm:$0xff]  ;;  %v38_v1 = vld [vmem:[#allocation5] sm:$0xff]  ;;  %s139_s4 = smov [#allocation7]  }
  0x26   :  { %v37_v2 = vld [vmem:[#allocation2 + $0x8] sm:$0xff]  ;;  %v40_v3 = vsub.f32 %v36_v0, %v38_v1  ;;  %v39_v4 = vld [vmem:[#allocation5 + $0x8] sm:$0xff]  ;;  %s52_s5 = sshll.u32 %s139_s4, 4  ;;  %s53_s5 = int_to_ptr.vmem [resolvable:$true] %s52_s5 }
  0x27   :  { %v41_v5 = vsub.f32 %v37_v2, %v39_v4  ;;  %s109_s6 = scalar_lea.vmem %s53_s5, 256  ;;  %p114_p3 = scmp.lt.s32.totalorder %s53_s5, %s53_s5 }
  0x28   :  { %v42_v6 = vand.u32 2147483647, %v40_v3  ;;  %p110_p2 = scmp.ne.s32.totalorder %s53_s5, %s109_s6  ;;  %p115_p4 = scmp.lt.s32.totalorder %s109_s6, %s109_s6 }
  0x29   :  { %v43_v7 = vand.u32 2147483647, %v41_v5 }
  0x2a   :  { %44 = vst [vmem:[#allocation7] sm:$0xff] %v42_v6  ;;  %p116_p5 = por %p115_p4, %p114_p3 }
  0x2b   :  { %45 = vst [vmem:[#allocation7 + $0x8] sm:$0xff] %v43_v7 }
  0x2c   :  { %p117_p6 = pnand %p116_p5, %p110_p2 }
  0x2e   :  { %120 = shalt.err (!%p117_p6)
}
  0x2f   :  { %s121_s8 = scalar_lea.hbm %s193_s2, 256 }
  0x30   :  { %p122_p7 = scmp.ne.s32.totalorder %s193_s2, %s121_s8  ;;  %p125_p8 = scmp.lt.u32.totalorder %s121_s8, %s193_s2 }
  0x32   :  { %p127_p9 = pnand %p125_p8, %p122_p7 }
  0x34   :  { %130 = shalt.err (!%p127_p9)
}
  0x35   :  { %55 = dma.vmem_to_hbm [thread:$0]  %s53_s5, 256, %s193_s2, [#allocation4]  }
  0x36   :  { %135 = dma.done.wait [#allocation4], 256  }
  0x37   :  { %136 = vsyncadd [#allocation4], 4294967040 }
  0x38   :  { %59 = vsyncpa [#allocation3], 1 }
  0x39   :  { %60 = vsyncpa [#allocation6], 1 }
  0x3a   :  { %61 = vsyncpa [#allocation4], 1 }

</bundles_post_ra>
